<compile_context>
chip_gen: v7x
topology: tpu7x:2x2x1
jax: 0.10.0
libtpu: 0.0.40
codegen_flags: <defaults>
</compile_context>

<pallas_src>
import functools

import jax
import jax.numpy as jnp
from jax.experimental import pallas as pl
from jax.experimental.pallas import tpu as pltpu

_LANE = 128     # lane width (last dim) for dense vreg / unmasked stores
_SUBLANE = 8    # sublane width (second-to-last dim) for f32


def _round_up(n: int, m: int) -> int:
    return ((n + m - 1) // m) * m


def _mlp_fused_kernel(*refs, n_layers: int, compute_dtype):
    """Whole MLP on VMEM-resident tiles.

    refs = (x, w0, b0, w1, b1, ..., w_{L-1}, b_{L-1}, out)
    Weights are stored in `compute_dtype` (bf16 by default) for the MXU;
    accumulation, bias-add and tanh are f32.
    """
    x_ref = refs[0]
    o_ref = refs[-1]
    h = x_ref[...]                                  # f32 activations
    for i in range(n_layers):
        w_ref = refs[1 + 2 * i]
        b_ref = refs[2 + 2 * i]
        # MXU matmul: operands in compute_dtype, f32 accumulate.
        h = jnp.dot(h.astype(compute_dtype), w_ref[...],
                    preferred_element_type=jnp.float32)
        h = h + b_ref[...]              # (1, out_p) f32, broadcasts over batch
        if i < n_layers - 1:            # Tanh between all but the last layer
            h = jnp.tanh(h)             # f32 on the EUP
    o_ref[...] = h.astype(o_ref.dtype)


def _mlp_forward_impl(padded_params, x, *, out_features: int):
    """Single fused pallas_call over pre-padded params; slices back to the
    logical (batch, out_features) shape."""
    batch, _ = x.shape
    batch_p = _round_up(batch, _SUBLANE)
    if batch_p != batch:                # no-op (skipped at trace time) for
        x = jnp.pad(x, ((0, batch_p - batch), (0, 0)))   # batch % 8 == 0
    out_p = padded_params[-1][0].shape[1]

    flat_inputs = [x]
    for w, b in padded_params:
        flat_inputs.append(w)
        flat_inputs.append(b)

    n_layers = len(padded_params)
    compute_dtype = padded_params[0][0].dtype
    kernel = functools.partial(_mlp_fused_kernel, n_layers=n_layers,
                               compute_dtype=compute_dtype)

    vmem = pl.BlockSpec(memory_space=pltpu.MemorySpace.VMEM)
    out_p_arr = pl.pallas_call(
        kernel,
        out_shape=jax.ShapeDtypeStruct((batch_p, out_p), jnp.float32),
        in_specs=[vmem] * len(flat_inputs),
        out_specs=vmem,
    )(*flat_inputs)

    # Lane-dense 128-wide store inside the kernel; the logical slice is done
    # here.  Downstream consumers that can take the padded slab should.
    return out_p_arr[:batch, :out_features]


mlp_forward = jax.jit(_mlp_forward_impl, static_argnames=("out_features",))


def init_mlp_params(key, sizes, bias=True, dtype=jnp.float32):
    """torch.nn.Linear-style init: uniform in [-1/sqrt(fan_in), 1/sqrt(fan_in)].
    Weights stored as (in, out) so the kernel computes x @ W."""
    params = []
    for i in range(len(sizes) - 1):
        fan_in, fan_out = sizes[i], sizes[i + 1]
        key, kw, kb = jax.random.split(key, 3)
        bound = 1.0 / (fan_in ** 0.5)
        w = jax.random.uniform(kw, (fan_in, fan_out), dtype, -bound, bound)
        if bias:
            b = jax.random.uniform(kb, (1, fan_out), dtype, -bound, bound)
        else:
            b = jnp.zeros((1, fan_out), dtype)
        params.append((w, b))
    return params


def pad_params(params, compute_dtype=jnp.bfloat16):
    """Zero-pad output feature dims to a multiple of 128 (lane-dense tiles).
    Layer 0 keeps its natural input dim (x is fed unpadded); layers >= 1 pad
    the input dim to 128 to match the previous layer's padded activation.
    Weights are cast to `compute_dtype` for the MXU; biases stay f32.
    Done once, outside the hot path."""
    padded = []
    for i, (w, b) in enumerate(params):
        in_f, out_f = w.shape
        in_p = in_f if i == 0 else _round_up(in_f, _LANE)
        out_p = _round_up(out_f, _LANE)
        w_p = jnp.pad(w, ((0, in_p - in_f), (0, out_p - out_f)))
        w_p = w_p.astype(compute_dtype)
        b_p = jnp.pad(b, ((0, 0), (0, out_p - out_f))).astype(jnp.float32)
        padded.append((w_p, b_p))
    return padded


def mlp_reference(params, x):
    """Pure-JAX f32 reference (unpadded) for correctness check."""
    n = len(params)
    for i, (w, b) in enumerate(params):
        x = x @ w + b
        if i < n - 1:
            x = jnp.tanh(x)
    return x


if __name__ == "__main__":
    key = jax.random.PRNGKey(0)
    emb_size = 32
    # -> Linear(32,64), Tanh, Linear(64,48), Tanh, Linear(48,16)
    sizes = (emb_size, 64, 48, 16)
    batch = 8  # NOTE: stack many small batches into one call when possible --
               # per-call overhead and the MXU weight load amortize over M.

    key, kx, kp = jax.random.split(key, 3)
    x = jax.random.normal(kx, (batch, emb_size), jnp.float32)
    params = init_mlp_params(kp, sizes, bias=True)
    ref = mlp_reference(params, x)

    # Default path: bf16 MXU operands, f32 accumulate / bias / tanh.
    padded_bf16 = pad_params(params, compute_dtype=jnp.bfloat16)
    out = mlp_forward(padded_bf16, x, out_features=sizes[-1])
    out = jax.block_until_ready(out)
    assert out.shape == (batch, sizes[-1])
    assert jnp.allclose(out, ref, atol=2e-2, rtol=2e-2), \
        "bf16-MXU path mismatch vs reference"

    # Strict f32 path (same kernel, f32 weights) for tight-tolerance use.
    padded_f32 = pad_params(params, compute_dtype=jnp.float32)
    out_f32 = mlp_forward(padded_f32, x, out_features=sizes[-1])
    out_f32 = jax.block_until_ready(out_f32)
    assert jnp.allclose(out_f32, ref, atol=1e-4, rtol=1e-4), \
        "f32 path mismatch vs reference"

    print("KERNEL_OK")
</pallas_src>

<mosaic_0001>
module attributes {stable_mosaic.version = 11 : i64} {
  func.func @_mlp_fused_kernel(%arg0: memref<8x32xf32, #tpu.memory_space<vmem>>, %arg1: memref<32x128xbf16, #tpu.memory_space<vmem>>, %arg2: memref<1x128xf32, #tpu.memory_space<vmem>>, %arg3: memref<128x128xbf16, #tpu.memory_space<vmem>>, %arg4: memref<1x128xf32, #tpu.memory_space<vmem>>, %arg5: memref<128x128xbf16, #tpu.memory_space<vmem>>, %arg6: memref<1x128xf32, #tpu.memory_space<vmem>>, %arg7: memref<8x128xf32, #tpu.memory_space<vmem>>) attributes {dimension_semantics = [], scalar_prefetch = 0 : i64, scratch_operands = 0 : i64, tpu.core_type = #tpu.core_type<tc>} {
    %c0 = arith.constant 0 : index
    %c0_0 = arith.constant 0 : index
    %0 = vector.load %arg0[%c0, %c0_0] : memref<8x32xf32, #tpu.memory_space<vmem>>, vector<8x32xf32>
    %1 = arith.truncf %0 : vector<8x32xf32> to vector<8x32xbf16>
    %c0_1 = arith.constant 0 : index
    %c0_2 = arith.constant 0 : index
    %2 = vector.load %arg1[%c0_1, %c0_2] : memref<32x128xbf16, #tpu.memory_space<vmem>>, vector<32x128xbf16>
    %cst = arith.constant dense<0.000000e+00> : vector<8x128xf32>
    %3 = tpu.matmul %1, %2, %cst {dimension_numbers = #tpu.dot_dimension_numbers<[1], [0], [0], [1], [0, 0, 1, 1], [], []>} : vector<8x32xbf16>, vector<32x128xbf16>, vector<8x128xf32> -> vector<8x128xf32>
    %c0_3 = arith.constant 0 : index
    %c0_4 = arith.constant 0 : index
    %4 = vector.load %arg2[%c0_3, %c0_4] : memref<1x128xf32, #tpu.memory_space<vmem>>, vector<1x128xf32>
    %5 = vector.broadcast %4 : vector<1x128xf32> to vector<8x128xf32>
    %6 = arith.addf %3, %5 : vector<8x128xf32>
    %7 = math.tanh %6 : vector<8x128xf32>
    %8 = arith.truncf %7 : vector<8x128xf32> to vector<8x128xbf16>
    %c0_5 = arith.constant 0 : index
    %c0_6 = arith.constant 0 : index
    %9 = vector.load %arg3[%c0_5, %c0_6] : memref<128x128xbf16, #tpu.memory_space<vmem>>, vector<128x128xbf16>
    %cst_7 = arith.constant dense<0.000000e+00> : vector<8x128xf32>
    %10 = tpu.matmul %8, %9, %cst_7 {dimension_numbers = #tpu.dot_dimension_numbers<[1], [0], [0], [1], [0, 0, 1, 1], [], []>} : vector<8x128xbf16>, vector<128x128xbf16>, vector<8x128xf32> -> vector<8x128xf32>
    %c0_8 = arith.constant 0 : index
    %c0_9 = arith.constant 0 : index
    %11 = vector.load %arg4[%c0_8, %c0_9] : memref<1x128xf32, #tpu.memory_space<vmem>>, vector<1x128xf32>
    %12 = vector.broadcast %11 : vector<1x128xf32> to vector<8x128xf32>
    %13 = arith.addf %10, %12 : vector<8x128xf32>
    %14 = math.tanh %13 : vector<8x128xf32>
    %15 = arith.truncf %14 : vector<8x128xf32> to vector<8x128xbf16>
    %c0_10 = arith.constant 0 : index
    %c0_11 = arith.constant 0 : index
    %16 = vector.load %arg5[%c0_10, %c0_11] : memref<128x128xbf16, #tpu.memory_space<vmem>>, vector<128x128xbf16>
    %cst_12 = arith.constant dense<0.000000e+00> : vector<8x128xf32>
    %17 = tpu.matmul %15, %16, %cst_12 {dimension_numbers = #tpu.dot_dimension_numbers<[1], [0], [0], [1], [0, 0, 1, 1], [], []>} : vector<8x128xbf16>, vector<128x128xbf16>, vector<8x128xf32> -> vector<8x128xf32>
    %c0_13 = arith.constant 0 : index
    %c0_14 = arith.constant 0 : index
    %18 = vector.load %arg6[%c0_13, %c0_14] : memref<1x128xf32, #tpu.memory_space<vmem>>, vector<1x128xf32>
    %19 = vector.broadcast %18 : vector<1x128xf32> to vector<8x128xf32>
    %20 = arith.addf %17, %19 : vector<8x128xf32>
    %c0_15 = arith.constant 0 : index
    %c0_16 = arith.constant 0 : index
    %21 = vector.load %arg7[%c0_15, %c0_16] : memref<8x128xf32, #tpu.memory_space<vmem>>, vector<8x128xf32>
    tpu.vector_store %arg7[%c0_15, %c0_16], %20 {strides = array<i32>} : memref<8x128xf32, #tpu.memory_space<vmem>>, vector<8x128xf32>,
    return
  }
}

</mosaic_0001>

<bundles_post_ra>
// kernel: _mlp_forward_impl.1
= control target key start
LH: loop header
LB: loop body
LE: loop exit
PB: predicated region body
PF: predicated region fallthrough
CT: control target
= control target key end

     0   :  { %12 = vsyncpa [#allocation3], 0  ;;  %s744_s0 = inlined_call_operand.vmem [shape: f32[8,32], index: 0, kind: input, shape index: {}]   ;;  %s745_s1 = inlined_call_operand.hbm [shape: bf16[32,128], index: 1, kind: input, shape index: {}]   ;;  %s746_s2 = inlined_call_operand.vmem [shape: f32[1,128], index: 2, kind: input, shape index: {}]   ;;  %s747_s3 = inlined_call_operand.hbm [shape: bf16[128,128], index: 3, kind: input, shape index: {}]   ;;  %s748_s4 = inlined_call_operand.vmem [shape: f32[1,128], index: 4, kind: input, shape index: {}]   ;;  %s749_s5 = inlined_call_operand.hbm [shape: bf16[128,128], index: 5, kind: input, shape index: {}]   ;;  %s750_s6 = inlined_call_operand.vmem [shape: f32[1,128], index: 6, kind: input, shape index: {}]   ;;  %s751_s7 = inlined_call_operand.hbm [shape: f32[8,128], index: 7, kind: output, shape index: {}]  }
   0x1   :  { %13 = vsyncpa [#allocation6], 0 }
   0x2   :  { %14 = vsyncpa [#allocation4], 0  ;;  %s596_s24 = smov [#allocation5]   ;;  %s597_s26 = smov [#allocation2]  }
   0x3   :  { %s36_s25 = sshll.u32 %s596_s24, 4  ;;  %s22_s27 = sshll.u32 %s597_s26, 4  ;;  %s37_s25 = int_to_ptr.vmem [resolvable:$true] %s36_s25  ;;  %s644_s27 = int_to_ptr.vmem [resolvable:$true] %s22_s27 }
   0x4   :  { %s502_s30 = scalar_lea.hbm %s747_s3, 1024 }
   0x5   :  { %p503_p0 = scmp.ne.s32.totalorder %s747_s3, %s502_s30  ;;  %p506_p1 = scmp.lt.u32.totalorder %s502_s30, %s747_s3 }
   0x7   :  { %p508_p2 = pnand %p506_p1, %p503_p0 }
   0x9   :  { %511 = shalt.err (!%p508_p2)
}
   0xa   :  { %s512_s12 = scalar_lea.vmem %s37_s25, 1024  ;;  %p517_p4 = scmp.lt.s32.totalorder %s37_s25, %s37_s25 }
   0xb   :  { %p513_p3 = scmp.ne.s32.totalorder %s37_s25, %s512_s12  ;;  %p518_p5 = scmp.lt.s32.totalorder %s512_s12, %s512_s12 }
   0xd   :  { %p519_p6 = por %p518_p5, %p517_p4 }
   0xf   :  { %p520_p7 = pnand %p519_p6, %p513_p3 }
  0x11   :  { %523 = shalt.err (!%p520_p7)
}
  0x12   :  { %s598_s13 = smov 64   ;;  %s599_s14 = smov 4  }
  0x13   :  { %42 = dma.hbm_to_vmem [thread:$0]  %s747_s3, 1024, %s37_s25, [#allocation6], %s598_s13, %s598_s13, %s599_s14  }
  0x14   :  { %s524_s19 = scalar_lea.hbm %s745_s1, 256 }
  0x15   :  { %p525_p8 = scmp.ne.s32.totalorder %s745_s1, %s524_s19  ;;  %p528_p9 = scmp.lt.u32.totalorder %s524_s19, %s745_s1 }
  0x17   :  { %p530_p10 = pnand %p528_p9, %p525_p8 }
  0x19   :  { %533 = shalt.err (!%p530_p10)
}
  0x1a   :  { %s534_s24 = scalar_lea.vmem %s644_s27, 256  ;;  %p539_p12 = scmp.lt.s32.totalorder %s644_s27, %s644_s27 }
  0x1b   :  { %p535_p11 = scmp.ne.s32.totalorder %s644_s27, %s534_s24  ;;  %p540_p13 = scmp.lt.s32.totalorder %s534_s24, %s534_s24 }
  0x1d   :  { %p541_p0 = por %p540_p13, %p539_p12 }
  0x1f   :  { %p542_p1 = pnand %p541_p0, %p535_p11 }
  0x21   :  { %545 = shalt.err (!%p542_p1)
}
  0x22   :  { %28 = dma.hbm_to_vmem [thread:$0]  %s745_s1, 256, %s644_s27, [#allocation3], %s598_s13, %s598_s13, %s599_s14  }
  0x23   :  { %s600_s26 = smov [#allocation7]   ;;  %s546_s8 = scalar_lea.hbm %s749_s5, 1024 }
  0x24   :  { %s50_s28 = sshll.u32 %s600_s26, 4  ;;  %p547_p2 = scmp.ne.s32.totalorder %s749_s5, %s546_s8  ;;  %s51_s28 = int_to_ptr.vmem [resolvable:$true] %s50_s28 }
  0x25   :  { %p550_p3 = scmp.lt.u32.totalorder %s546_s8, %s749_s5 }
  0x27   :  { %p552_p4 = pnand %p550_p3, %p547_p2 }
  0x29   :  { %555 = shalt.err (!%p552_p4)
}
  0x2a   :  { %s556_s15 = scalar_lea.vmem %s51_s28, 1024  ;;  %p561_p6 = scmp.lt.s32.totalorder %s51_s28, %s51_s28 }
  0x2b   :  { %p557_p5 = scmp.ne.s32.totalorder %s51_s28, %s556_s15  ;;  %p562_p7 = scmp.lt.s32.totalorder %s556_s15, %s556_s15 }
  0x2d   :  { %p563_p8 = por %p562_p7, %p561_p6 }
  0x2f   :  { %p564_p9 = pnand %p563_p8, %p557_p5 }
  0x31   :  { %567 = shalt.err (!%p564_p9)
}
  0x32   :  { %56 = dma.hbm_to_vmem [thread:$0]  %s749_s5, 1024, %s51_s28, [#allocation6], %s598_s13, %s598_s13, %s599_s14  }
  0x33   :  { %590 = dma.done.wait [#allocation3], 256  }
  0x34   :  { %591 = vsyncadd [#allocation3], 4294967040 }
  0x35   :  { %592 = dma.done.wait [#allocation6], 2048  }
  0x36   :  { %593 = vsyncadd [#allocation6], 4294965248  ;;  %v601_v0 = vmov 0.0   ;;  %vm602_vm0 = vmmov 0   ;;  %v480_v1 = vld [vmem:[#allocation2] sm:$0xff]   ;;  %v481_v2 = vld [vmem:[#allocation2 + $0x8] sm:$0xff]  }
  0x37   :  { %424 = vmatprep.subr.bf16.mxu0 %v601_v0  ;;  %428 = vmatprep.mubr.msk.bf16.mxu0 %vm602_vm0, %v601_v0  ;;  %v69_v3 = vld [vmem:[%s744_s0] sm:$0xff]  ;;  %v482_v4 = vld [vmem:[#allocation5] sm:$0xff]   ;;  %v483_v6 = vld [vmem:[#allocation5 + $0x8] sm:$0xff]   ;;  %vm94_vm1 = vcmask 261120   ;;  %s603_s19 = smov [#allocation8]  }
  0x38   :  { %432 = vmatprep.subr.bf16.mxu1 %v601_v0  ;;  %448 = vmatprep.mubr.msk.bf16.mxu1 %vm602_vm0, %v601_v0  ;;  %v70_v5 = vpack.c.bf16 %v69_v3, %v69_v3  ;;  %v484_v7 = vld [vmem:[#allocation5 + $0x10] sm:$0xff]   ;;  %v485_v8 = vld [vmem:[#allocation5 + $0x18] sm:$0xff]   ;;  %v486_v9 = vld [vmem:[#allocation5 + $0x20] sm:$0xff]   ;;  %s371_s20 = sshll.u32 %s603_s19, 4  ;;  %s372_s20 = int_to_ptr.vmem [resolvable:$true] %s371_s20 }
  0x39   :  { %425 = vmatpush3.bf16.msra.mxu0 %v480_v1  ;;  %433 = vmatpush3.bf16.msra.mxu1 %v482_v4  ;;  %v487_v10 = vld [vmem:[#allocation5 + $0x28] sm:$0xff]   ;;  %v488_v11 = vld [vmem:[#allocation5 + $0x30] sm:$0xff]   ;;  %v489_v12 = vld [vmem:[#allocation5 + $0x38] sm:$0xff]   ;;  %p573_p11 = scmp.lt.s32.totalorder %s372_s20, %s372_s20 }
  0x3a   :  { %426 = vmatprep.subr.bf16.mxu0 %v601_v0  ;;  %434 = vmatprep.subr.bf16.mxu1 %v601_v0  ;;  %v490_v13 = vld [vmem:[#allocation7] sm:$0xff]   ;;  %v491_v14 = vld [vmem:[#allocation7 + $0x8] sm:$0xff]   ;;  %v492_v15 = vld [vmem:[#allocation7 + $0x10] sm:$0xff]  }
  0x3b   :  { %v493_v16 = vld [vmem:[#allocation7 + $0x18] sm:$0xff]   ;;  %v381_v17 = vld [vmem:[%s746_s2] ss:$0 sm:$0xff]  ;;  %v494_v25 = vld [vmem:[#allocation7 + $0x20] sm:$0xff]  }
  0x3c   :  { %v495_v26 = vld [vmem:[#allocation7 + $0x28] sm:$0xff]   ;;  %v496_v27 = vld [vmem:[#allocation7 + $0x30] sm:$0xff]   ;;  %v497_v28 = vld [vmem:[#allocation7 + $0x38] sm:$0xff]  }
  0x3d   :  { %427 = vmatpush3.bf16.msra.mxu0 %v481_v2  ;;  %435 = vmatpush3.bf16.msra.mxu1 %v483_v6  ;;  %v385_v29 = vld [vmem:[%s748_s4] ss:$0 sm:$0xff]  ;;  %s568_s4 = scalar_lea.vmem %s372_s20, 128 }
  0x3e   :  { %452 = vmatprep.subr.bf16.mxu0 %v601_v0  ;;  %436 = vmatprep.subr.bf16.mxu1 %v601_v0  ;;  %v394_v37 = vld [vmem:[%s750_s6] ss:$0 sm:$0xff]  ;;  %p569_p10 = scmp.ne.s32.totalorder %s372_s20, %s568_s4  ;;  %p574_p12 = scmp.lt.s32.totalorder %s568_s4, %s568_s4 }
  0x40   :  { %429 = vmatmul.mubr.msk.bf16.vlgmr.msra.gmra.mrb[0].mxu0 %vm94_vm1, %v70_v5  ;;  %p575_p13 = por %p574_p12, %p573_p11 }
  0x41   :  { %468 = vmatprep.mubr.msk.bf16.mxu0 %vm602_vm0, %v601_v0  ;;  %437 = vmatpush3.bf16.msra.mxu1 %v484_v7 }
  0x42   :  { %438 = vmatprep.subr.bf16.mxu1 %v601_v0  ;;  %453 = vmatpush3.bf16.msra.mxu0 %v490_v13  ;;  %p576_p0 = pnand %p575_p13, %p569_p10 }
  0x43   :  { %454 = vmatprep.subr.bf16.mxu0 %v601_v0 }
  0x45   :  { %439 = vmatpush3.bf16.msra.mxu1 %v485_v8 }
  0x46   :  { %440 = vmatprep.subr.bf16.mxu1 %v601_v0  ;;  %455 = vmatpush3.bf16.msra.mxu0 %v491_v14 }
  0x47   :  { %456 = vmatprep.subr.bf16.mxu0 %v601_v0 }
  0x49   :  { %441 = vmatpush3.bf16.msra.mxu1 %v486_v9 }
  0x4a   :  { %442 = vmatprep.subr.bf16.mxu1 %v601_v0  ;;  %457 = vmatpush3.bf16.msra.mxu0 %v492_v15 }
  0x4b   :  { %458 = vmatprep.subr.bf16.mxu0 %v601_v0 }
  0x4d   :  { %443 = vmatpush3.bf16.msra.mxu1 %v487_v10 }
  0x4e   :  { %444 = vmatprep.subr.bf16.mxu1 %v601_v0  ;;  %459 = vmatpush3.bf16.msra.mxu0 %v493_v16 }
  0x4f   :  { %460 = vmatprep.subr.bf16.mxu0 %v601_v0 }
  0x51   :  { %445 = vmatpush3.bf16.msra.mxu1 %v488_v11 }
  0x52   :  { %446 = vmatprep.subr.bf16.mxu1 %v601_v0  ;;  %461 = vmatpush3.bf16.msra.mxu0 %v494_v25 }
  0x53   :  { %462 = vmatprep.subr.bf16.mxu0 %v601_v0 }
  0x55   :  { %447 = vmatpush3.bf16.msra.mxu1 %v489_v12 }
  0x56   :  { %463 = vmatpush3.bf16.msra.mxu0 %v495_v26 }
  0x57   :  { %464 = vmatprep.subr.bf16.mxu0 %v601_v0 }
  0x5a   :  { %465 = vmatpush3.bf16.msra.mxu0 %v496_v27 }
  0x5b   :  { %466 = vmatprep.subr.bf16.mxu0 %v601_v0 }
  0x5e   :  { %467 = vmatpush3.bf16.msra.mxu0 %v497_v28 }
 0x113   :  { %v132_v18 = vpop.f32.mrb[0].mxu0 }
 0x114   :  { %v133_v19 = vadd.f32 %v381_v17, %v132_v18  ;;  %v430_v20 = vpop.f32.mrb[1].mxu0 }
 0x115   :  { %v135_v21 = vpop.f32.mrb[2].mxu0 }
 0x116   :  { %498 = vtanh.f32 %v133_v19  ;;  %v431_v22 = vpop.f32.mrb[3].mxu0 }
 0x120   :  { %v499_v23 = vpop.eup %498 }
 0x121   :  { %v139_v24 = vpack.c.bf16 %v499_v23, %v499_v23 }
 0x123   :  { %449 = vmatmul.mubr.bf16.vlgmr.msra.gmra.mrb[0].mxu1 %v139_v24 }
 0x1f6   :  { %v245_v30 = vpop.f32.mrb[0].mxu1 }
 0x1f7   :  { %v246_v31 = vadd.f32 %v385_v29, %v245_v30  ;;  %v450_v32 = vpop.f32.mrb[1].mxu1 }
 0x1f8   :  { %v248_v33 = vpop.f32.mrb[2].mxu1 }
 0x1f9   :  { %500 = vtanh.f32 %v246_v31  ;;  %v451_v34 = vpop.f32.mrb[3].mxu1 }
 0x203   :  { %v501_v35 = vpop.eup %500 }
 0x204   :  { %v252_v36 = vpack.c.bf16 %v501_v35, %v501_v35 }
 0x206   :  { %469 = vmatmul.mubr.bf16.vlgmr.msra.gmra.mrb[4].mxu0 %v252_v36 }
 0x2d9   :  { %v358_v38 = vpop.f32.mrb[4].mxu0 }
 0x2da   :  { %v359_v39 = vadd.f32 %v394_v37, %v358_v38  ;;  %v470_v40 = vpop.f32.mrb[5].mxu0 }
 0x2db   :  { %v361_v41 = vpop.f32.mrb[6].mxu0 }
 0x2dc   :  { %364 = vst [vmem:[#allocation8] sm:$0xff] %v359_v39  ;;  %v471_v42 = vpop.f32.mrb[7].mxu0 }
 0x2dd   :  { %579 = shalt.err (!%p576_p0)
}
 0x2de   :  { %s580_s6 = scalar_lea.hbm %s751_s7, 128 }
 0x2df   :  { %p581_p1 = scmp.ne.s32.totalorder %s751_s7, %s580_s6  ;;  %p584_p2 = scmp.lt.u32.totalorder %s580_s6, %s751_s7 }
 0x2e1   :  { %p586_p3 = pnand %p584_p2, %p581_p1 }
 0x2e3   :  { %589 = shalt.err (!%p586_p3)
}
 0x2e4   :  { %374 = dma.vmem_to_hbm [thread:$0]  %s372_s20, 128, %s751_s7, [#allocation4]  }
 0x2e5   :  { %594 = dma.done.wait [#allocation4], 128  }
 0x2e6   :  { %595 = vsyncadd [#allocation4], 4294967168 }
 0x2e7   :  { %378 = vsyncpa [#allocation3], 1 }
 0x2e8   :  { %379 = vsyncpa [#allocation6], 1 }
 0x2e9   :  { %380 = vsyncpa [#allocation4], 1 }

</bundles_post_ra>
